<compile_context>
chip_gen: v5e
topology: v5e:2x2
jax: 0.10.0
libtpu: 0.0.40
codegen_flags: <defaults>
</compile_context>

<pallas_src>
import jax
import jax.numpy as jnp
from jax.experimental import pallas as pl
from jax.experimental.pallas import tpu as pltpu


HIDDEN = 256   # fixed by the module (l1/l2 are 256-wide)
LANE = 128
SUBLANE = 8
TILE_ALIGN = 16  # multiple of 16 keeps bf16 sublane packing happy for bf16 in/out


def _round_up(x, m):
    return ((x + m - 1) // m) * m


def encoder_kernel(x_ref, w1_ref, b1_ref, w2_ref, b2_ref, w3_ref, b3_ref, o_ref):
    """Fused 3-layer MLP: bf16 MXU operands (weights pre-cast), f32 accumulate,
    f32 bias + ReLU, store in o_ref.dtype."""
    x = x_ref[...]
    if x.dtype != jnp.bfloat16:          # no-op if the caller already feeds bf16
        x = x.astype(jnp.bfloat16)
    h = jnp.dot(x, w1_ref[...], preferred_element_type=jnp.float32) + b1_ref[...]
    h = jnp.maximum(h, 0.0).astype(jnp.bfloat16)
    h = jnp.dot(h, w2_ref[...], preferred_element_type=jnp.float32) + b2_ref[...]
    h = jnp.maximum(h, 0.0).astype(jnp.bfloat16)
    h = jnp.dot(h, w3_ref[...], preferred_element_type=jnp.float32) + b3_ref[...]
    o_ref[...] = jnp.maximum(h, 0.0).astype(o_ref.dtype)


def init_encoder_params(key, state_dim, encoder_dim):
    """Deterministic init matching nn.Linear's U(-1/sqrt(fan_in), 1/sqrt(fan_in))."""
    ks = jax.random.split(key, 6)

    def lin(kw, kb, fan_in, fan_out):
        bound = 1.0 / jnp.sqrt(fan_in)
        w = jax.random.uniform(kw, (fan_in, fan_out), jnp.float32, -bound, bound)
        b = jax.random.uniform(kb, (1, fan_out), jnp.float32, -bound, bound)
        return w, b

    w1, b1 = lin(ks[0], ks[1], state_dim, HIDDEN)
    w2, b2 = lin(ks[2], ks[3], HIDDEN, HIDDEN)
    w3, b3 = lin(ks[4], ks[5], HIDDEN, encoder_dim)
    return (w1, b1, w2, b2, w3, b3)


def prepare_encoder_params(params):
    """One-time param prep (hoisted out of the per-call wrapper):
      * cast weights to bf16 (MXU operand dtype), keep biases f32,
      * lane-pad the last layer to a multiple of 128 only when enc_dim >= 128
        (for small enc_dim the narrow output block writes fewer HBM bytes).
    Returns (prepared_params, enc_dim)."""
    w1, b1, w2, b2, w3, b3 = params
    enc_dim = w3.shape[1]
    if enc_dim >= LANE and enc_dim % LANE != 0:
        enc_out = _round_up(enc_dim, LANE)
        w3 = jnp.pad(w3, ((0, 0), (0, enc_out - enc_dim)))
        b3 = jnp.pad(b3, ((0, 0), (0, enc_out - enc_dim)))
    prepared = (
        w1.astype(jnp.bfloat16), b1.astype(jnp.float32),
        w2.astype(jnp.bfloat16), b2.astype(jnp.float32),
        w3.astype(jnp.bfloat16), b3.astype(jnp.float32),
    )
    return prepared, enc_dim


def _pick_batch_tile(B, batch_tile):
    """Rows of `state` per grid step.
    Small batches: a single tile (per-step pipeline overhead would dominate).
    Larger batches: aim for >=4 grid steps — two per v7x TensorCore with the
    'parallel' batch axis, so both cores work AND each still pipelines — while
    capping the tile at batch_tile and keeping padding waste to < one tile."""
    b8 = _round_up(B, SUBLANE)
    if b8 <= 2 * LANE:
        return b8                      # single tile; block dim == full array dim
    return min(batch_tile, _round_up(pl.cdiv(b8, 4), TILE_ALIGN))


def encoder_forward(state, prepared_params, enc_dim=None, *,
                    batch_tile=512, out_dtype=None):
    """Pallas TPU forward pass. `prepared_params` must come from
    prepare_encoder_params (bf16 weights, optional lane-padded last layer)."""
    w1, b1, w2, b2, w3, b3 = prepared_params
    B, state_dim = state.shape
    hidden = w1.shape[1]
    enc_out = w3.shape[1]                    # possibly lane-padded width
    if enc_dim is None:
        enc_dim = enc_out
    if out_dtype is None:
        out_dtype = state.dtype

    assert batch_tile % TILE_ALIGN == 0, "batch_tile must be a multiple of 16"

    tile = _pick_batch_tile(B, batch_tile)
    b_pad = _round_up(B, tile)
    if b_pad != B:
        state = jnp.pad(state, ((0, b_pad - B), (0, 0)))

    grid = (b_pad // tile,)

    def fixed(i):  # weights/biases: same block every step -> revisited, no re-DMA
        return (0, 0)

    out = pl.pallas_call(
        encoder_kernel,
        out_shape=jax.ShapeDtypeStruct((b_pad, enc_out), out_dtype),
        grid_spec=pltpu.PrefetchScalarGridSpec(
            num_scalar_prefetch=0,
            grid=grid,
            in_specs=[
                pl.BlockSpec((tile, state_dim), lambda i: (i, 0)),   # state tile
                pl.BlockSpec((state_dim, hidden), fixed),            # w1 (bf16)
                pl.BlockSpec((1, hidden), fixed),                    # b1 (f32)
                pl.BlockSpec((hidden, hidden), fixed),               # w2 (bf16)
                pl.BlockSpec((1, hidden), fixed),                    # b2 (f32)
                pl.BlockSpec((hidden, enc_out), fixed),              # w3 (bf16)
                pl.BlockSpec((1, enc_out), fixed),                   # b3 (f32)
            ],
            # TODO(synk): add pipeline_mode=pl.Buffered(3) here if profiling shows
            # the output writeback exposed between grid steps.
            out_specs=pl.BlockSpec((tile, enc_out), lambda i: (i, 0)),
        ),
        compiler_params=pltpu.CompilerParams(
            dimension_semantics=("parallel",),      # batch steps shard across v7x's 2 TCs
            vmem_limit_bytes=32 * 1024 * 1024,      # explicit; huge headroom at these tiles
        ),
    )(state, w1, b1, w2, b2, w3, b3)

    if b_pad != B or enc_out != enc_dim:
        out = out[:B, :enc_dim]
    return out


def encoder_reference_bf16(state, raw_params):
    """Reference with the same bf16-operand / f32-accumulate recipe as the kernel."""
    w1, b1, w2, b2, w3, b3 = raw_params

    def lin_relu(x, w, b):
        y = jnp.dot(x.astype(jnp.bfloat16), w.astype(jnp.bfloat16),
                    preferred_element_type=jnp.float32) + b
        return jax.nn.relu(y)

    h = lin_relu(state, w1, b1)
    h = lin_relu(h, w2, b2)
    return lin_relu(h, w3, b3)


def encoder_reference_f32(state, raw_params):
    w1, b1, w2, b2, w3, b3 = raw_params
    h = jax.nn.relu(state @ w1 + b1)
    h = jax.nn.relu(h @ w2 + b2)
    return jax.nn.relu(h @ w3 + b3)


if __name__ == "__main__":
    key = jax.random.PRNGKey(0)
    k_param, k_param2, k_state, k_state2 = jax.random.split(key, 4)

    # --- small demo shape: single tile, narrow (unpadded) 32-lane output ---
    batch, state_dim, encoder_dim = 8, 16, 32
    raw = init_encoder_params(k_param, state_dim, encoder_dim)
    prep, enc_dim = prepare_encoder_params(raw)

    state = jax.random.normal(k_state, (batch, state_dim), dtype=jnp.float32)
    out = jax.block_until_ready(encoder_forward(state, prep, enc_dim))
    assert out.shape == (batch, encoder_dim) and out.dtype == jnp.float32
    assert jnp.allclose(out, encoder_reference_bf16(state, raw), atol=1e-3, rtol=1e-3), \
        "Pallas output mismatch vs bf16 reference"
    assert jnp.allclose(out, encoder_reference_f32(state, raw), atol=5e-2, rtol=5e-2), \
        "Pallas output mismatch vs f32 reference"

    # --- multi-step grid: B=300 -> tile 80, 4 steps, 16 padded rows; bf16 writeback ---
    batch2 = 300
    state2 = jax.random.normal(k_state2, (batch2, state_dim), dtype=jnp.float32)
    out2 = jax.block_until_ready(
        encoder_forward(state2, prep, enc_dim, out_dtype=jnp.bfloat16))
    assert out2.shape == (batch2, encoder_dim) and out2.dtype == jnp.bfloat16
    assert jnp.allclose(out2.astype(jnp.float32),
                        encoder_reference_bf16(state2, raw),
                        atol=5e-2, rtol=5e-2), \
        "Pallas (tiled, bf16 out) output mismatch vs bf16 reference"

    # --- enc_dim >= 128, not a multiple of 128: exercises the one-time lane padding ---
    encoder_dim3 = 160
    raw3 = init_encoder_params(k_param2, state_dim, encoder_dim3)
    prep3, enc_dim3 = prepare_encoder_params(raw3)
    out3 = jax.block_until_ready(encoder_forward(state, prep3, enc_dim3))
    assert out3.shape == (batch, encoder_dim3)
    assert jnp.allclose(out3, encoder_reference_bf16(state, raw3), atol=1e-3, rtol=1e-3), \
        "Pallas (padded enc_dim) output mismatch vs bf16 reference"

    print("KERNEL_OK")
</pallas_src>

<mosaic_0001>
module attributes {stable_mosaic.version = 11 : i64} {
  func.func @encoder_kernel(%arg0: i32, %arg1: memref<8x16xf32, #tpu.memory_space<vmem>>, %arg2: memref<16x256xbf16, #tpu.memory_space<vmem>>, %arg3: memref<1x256xf32, #tpu.memory_space<vmem>>, %arg4: memref<256x256xbf16, #tpu.memory_space<vmem>>, %arg5: memref<1x256xf32, #tpu.memory_space<vmem>>, %arg6: memref<256x32xbf16, #tpu.memory_space<vmem>>, %arg7: memref<1x32xf32, #tpu.memory_space<vmem>>, %arg8: memref<8x32xf32, #tpu.memory_space<vmem>>) attributes {dimension_semantics = [#tpu.dimension_semantics<parallel>], iteration_bounds = array<i64: 1>, scalar_prefetch = 0 : i64, scratch_operands = 0 : i64, tpu.core_type = #tpu.core_type<tc>, window_params = [{transform_indices = @transform_0, window_bounds = array<i64: 8, 16>}, {pipeline_mode = #tpu.pipeline_mode<synchronous>, transform_indices = @transform_1, window_bounds = array<i64: 16, 256>}, {pipeline_mode = #tpu.pipeline_mode<synchronous>, transform_indices = @transform_2, window_bounds = array<i64: 1, 256>}, {pipeline_mode = #tpu.pipeline_mode<synchronous>, transform_indices = @transform_3, window_bounds = array<i64: 256, 256>}, {pipeline_mode = #tpu.pipeline_mode<synchronous>, transform_indices = @transform_4, window_bounds = array<i64: 1, 256>}, {pipeline_mode = #tpu.pipeline_mode<synchronous>, transform_indices = @transform_5, window_bounds = array<i64: 256, 32>}, {pipeline_mode = #tpu.pipeline_mode<synchronous>, transform_indices = @transform_6, window_bounds = array<i64: 1, 32>}, {transform_indices = @transform_7, window_bounds = array<i64: 8, 32>}]} {
    %c0 = arith.constant 0 : index
    %c0_0 = arith.constant 0 : index
    %0 = vector.load %arg1[%c0, %c0_0] : memref<8x16xf32, #tpu.memory_space<vmem>>, vector<8x16xf32>
    %1 = arith.truncf %0 : vector<8x16xf32> to vector<8x16xbf16>
    %c0_1 = arith.constant 0 : index
    %c0_2 = arith.constant 0 : index
    %2 = vector.load %arg2[%c0_1, %c0_2] : memref<16x256xbf16, #tpu.memory_space<vmem>>, vector<16x256xbf16>
    %cst = arith.constant dense<0.000000e+00> : vector<8x256xf32>
    %3 = tpu.matmul %1, %2, %cst {dimension_numbers = #tpu.dot_dimension_numbers<[1], [0], [0], [1], [0, 0, 1, 1], [], []>} : vector<8x16xbf16>, vector<16x256xbf16>, vector<8x256xf32> -> vector<8x256xf32>
    %c0_3 = arith.constant 0 : index
    %c0_4 = arith.constant 0 : index
    %4 = vector.load %arg3[%c0_3, %c0_4] : memref<1x256xf32, #tpu.memory_space<vmem>>, vector<1x256xf32>
    %5 = vector.broadcast %4 : vector<1x256xf32> to vector<8x256xf32>
    %6 = arith.addf %3, %5 : vector<8x256xf32>
    %cst_5 = arith.constant 0.000000e+00 : f32
    %7 = vector.broadcast %cst_5 : f32 to vector<8x256xf32>
    %8 = arith.maximumf %6, %7 : vector<8x256xf32>
    %9 = arith.truncf %8 : vector<8x256xf32> to vector<8x256xbf16>
    %c0_6 = arith.constant 0 : index
    %c0_7 = arith.constant 0 : index
    %10 = vector.load %arg4[%c0_6, %c0_7] : memref<256x256xbf16, #tpu.memory_space<vmem>>, vector<256x256xbf16>
    %cst_8 = arith.constant dense<0.000000e+00> : vector<8x256xf32>
    %11 = tpu.matmul %9, %10, %cst_8 {dimension_numbers = #tpu.dot_dimension_numbers<[1], [0], [0], [1], [0, 0, 1, 1], [], []>} : vector<8x256xbf16>, vector<256x256xbf16>, vector<8x256xf32> -> vector<8x256xf32>
    %c0_9 = arith.constant 0 : index
    %c0_10 = arith.constant 0 : index
    %12 = vector.load %arg5[%c0_9, %c0_10] : memref<1x256xf32, #tpu.memory_space<vmem>>, vector<1x256xf32>
    %13 = vector.broadcast %12 : vector<1x256xf32> to vector<8x256xf32>
    %14 = arith.addf %11, %13 : vector<8x256xf32>
    %cst_11 = arith.constant 0.000000e+00 : f32
    %15 = vector.broadcast %cst_11 : f32 to vector<8x256xf32>
    %16 = arith.maximumf %14, %15 : vector<8x256xf32>
    %17 = arith.truncf %16 : vector<8x256xf32> to vector<8x256xbf16>
    %c0_12 = arith.constant 0 : index
    %c0_13 = arith.constant 0 : index
    %18 = vector.load %arg6[%c0_12, %c0_13] : memref<256x32xbf16, #tpu.memory_space<vmem>>, vector<256x32xbf16>
    %cst_14 = arith.constant dense<0.000000e+00> : vector<8x32xf32>
    %19 = tpu.matmul %17, %18, %cst_14 {dimension_numbers = #tpu.dot_dimension_numbers<[1], [0], [0], [1], [0, 0, 1, 1], [], []>} : vector<8x256xbf16>, vector<256x32xbf16>, vector<8x32xf32> -> vector<8x32xf32>
    %c0_15 = arith.constant 0 : index
    %c0_16 = arith.constant 0 : index
    %20 = vector.load %arg7[%c0_15, %c0_16] : memref<1x32xf32, #tpu.memory_space<vmem>>, vector<1x32xf32>
    %21 = vector.broadcast %20 : vector<1x32xf32> to vector<8x32xf32>
    %22 = arith.addf %19, %21 : vector<8x32xf32>
    %cst_17 = arith.constant 0.000000e+00 : f32
    %23 = vector.broadcast %cst_17 : f32 to vector<8x32xf32>
    %24 = arith.maximumf %22, %23 : vector<8x32xf32>
    %c0_18 = arith.constant 0 : index
    %c0_19 = arith.constant 0 : index
    %25 = vector.load %arg8[%c0_18, %c0_19] : memref<8x32xf32, #tpu.memory_space<vmem>>, vector<8x32xf32>
    tpu.vector_store %arg8[%c0_18, %c0_19], %24 {strides = array<i32>} : memref<8x32xf32, #tpu.memory_space<vmem>>, vector<8x32xf32>,
    return
  }
  func.func @transform_0(%arg0: i32) -> (i32, i32) {
    %c0_i32 = arith.constant 0 : i32
    %c0_i32_0 = arith.constant 0 : i32
    return %arg0, %c0_i32 : i32, i32
  }
  func.func @transform_1(%arg0: i32) -> (i32, i32) {
    %c0_i32 = arith.constant 0 : i32
    %c0_i32_0 = arith.constant 0 : i32
    %c0_i32_1 = arith.constant 0 : i32
    return %c0_i32, %c0_i32_0 : i32, i32
  }
  func.func @transform_2(%arg0: i32) -> (i32, i32) {
    %c0_i32 = arith.constant 0 : i32
    %c0_i32_0 = arith.constant 0 : i32
    %c0_i32_1 = arith.constant 0 : i32
    return %c0_i32, %c0_i32_0 : i32, i32
  }
  func.func @transform_3(%arg0: i32) -> (i32, i32) {
    %c0_i32 = arith.constant 0 : i32
    %c0_i32_0 = arith.constant 0 : i32
    %c0_i32_1 = arith.constant 0 : i32
    return %c0_i32, %c0_i32_0 : i32, i32
  }
  func.func @transform_4(%arg0: i32) -> (i32, i32) {
    %c0_i32 = arith.constant 0 : i32
    %c0_i32_0 = arith.constant 0 : i32
    %c0_i32_1 = arith.constant 0 : i32
    return %c0_i32, %c0_i32_0 : i32, i32
  }
  func.func @transform_5(%arg0: i32) -> (i32, i32) {
    %c0_i32 = arith.constant 0 : i32
    %c0_i32_0 = arith.constant 0 : i32
    %c0_i32_1 = arith.constant 0 : i32
    return %c0_i32, %c0_i32_0 : i32, i32
  }
  func.func @transform_6(%arg0: i32) -> (i32, i32) {
    %c0_i32 = arith.constant 0 : i32
    %c0_i32_0 = arith.constant 0 : i32
    %c0_i32_1 = arith.constant 0 : i32
    return %c0_i32, %c0_i32_0 : i32, i32
  }
  func.func @transform_7(%arg0: i32) -> (i32, i32) {
    %c0_i32 = arith.constant 0 : i32
    %c0_i32_0 = arith.constant 0 : i32
    return %arg0, %c0_i32 : i32, i32
  }
}

</mosaic_0001>

<bundles_post_ra>
// kernel: tpu_custom_call.1
= control target key start
LH: loop header
LB: loop body
LE: loop exit
PB: predicated region body
PF: predicated region fallthrough
CT: control target
= control target key end

     0   :  { %12 = vsyncpa [#allocation3], 0  ;;  %s963_s0 = inlined_call_operand.vmem [shape: f32[8,16], index: 0, kind: input, shape index: {}]   ;;  %s964_s1 = inlined_call_operand.vmem [shape: bf16[16,256], index: 1, kind: input, shape index: {}]   ;;  %s965_s2 = inlined_call_operand.vmem [shape: f32[1,256], index: 2, kind: input, shape index: {}]   ;;  %s966_s3 = inlined_call_operand.hbm [shape: bf16[256,256], index: 3, kind: input, shape index: {}]   ;;  %s967_s4 = inlined_call_operand.vmem [shape: f32[1,256], index: 4, kind: input, shape index: {}]   ;;  %s968_s5 = inlined_call_operand.vmem [shape: bf16[256,32], index: 5, kind: input, shape index: {}]   ;;  %s969_s6 = inlined_call_operand.vmem [shape: f32[1,32], index: 6, kind: input, shape index: {}]   ;;  %s970_s7 = inlined_call_operand.hbm [shape: f32[8,32], index: 7, kind: output, shape index: {}]  }
   0x1   :  { %13 = vsyncpa [#allocation4], 0  ;;  %s24_s26 = sshll.u32 %s966_s3, 4  ;;  %s839_s27 = smov [#allocation2]   ;;  %s25_s26 = int_to_ptr.hbm [resolvable:$true] %s24_s26 }
   0x2   :  { %s26_s28 = sshll.u32 %s839_s27, 4  ;;  %s840_s29 = smov 128   ;;  %s27_s28 = int_to_ptr.vmem [resolvable:$true] %s26_s28 }
   0x3   :  { %s841_s30 = smov 8  }
   0x4   :  { %32 = dma.hbm_to_vmem [thread:$0]  %s25_s26, 4096, %s27_s28, [#allocation3], %s840_s29, %s840_s29, %s841_s30  }
   0x5   :  { %835 = dma.done.wait [#allocation3], 4096  }
   0x6   :  { %836 = vsyncadd [#allocation3], 4294963200  ;;  %v532_v0 = vld [vmem:[%s964_s1] sm:$0xf]  ;;  %v733_v1 = vld [vmem:[%s964_s1 + $0x4] sm:$0xf0] }
   0x7   :  { %v732_v2 = vld [vmem:[%s964_s1 + $0x4] sm:$0xf]  ;;  %v533_v3 = vor.u32 %v733_v1, %v532_v0  ;;  %v534_v4 = vld [vmem:[%s964_s1 + $0x8] sm:$0xf0]  ;;  %vm64_vm0 = vcmask 130048   ;;  %s842_s24 = smov [#allocation5]  }
   0x8   :  { %v44_v5 = vld [vmem:[%s963_s0] sm:$0xff]  ;;  %v598_v6 = vld [vmem:[#allocation2 + $0x70] sm:$0xf]  ;;  %v537_v7 = vor.u32 %v732_v2, %v534_v4  ;;  %v749_v9 = vld [vmem:[#allocation2 + $0x74] sm:$0xf0]  ;;  %s518_s25 = sshll.u32 %s842_s24, 4  ;;  %s519_s25 = int_to_ptr.vmem [resolvable:$true] %s518_s25 }
   0x9   :  { %v45_v8 = vpack.c.bf16 %v44_v5, %v44_v5  ;;  %v662_v10 = vld [vmem:[#allocation2 + $0xf0] sm:$0xf]  ;;  %v765_v11 = vld [vmem:[#allocation2 + $0xf4] sm:$0xf0]  ;;  %75 = vmatpush.bf16.msra.mxu0 %v533_v3  ;;  %v599_v12 = vor.u32 %v749_v9, %v598_v6  ;;  %v748_v14 = vld [vmem:[#allocation2 + $0x74] sm:$0xf] }
   0xa   :  { %v663_v13 = vor.u32 %v765_v11, %v662_v10  ;;  %v600_v15 = vld [vmem:[#allocation2 + $0x78] sm:$0xf0]  ;;  %v764_v16 = vld [vmem:[#allocation2 + $0xf4] sm:$0xf]  ;;  %88 = vmatpush.bf16.msra.mxu1 %v537_v7  ;;  %v590_v19 = vld [vmem:[#allocation2 + $0x60] sm:$0xf] }
   0xb   :  { %v603_v17 = vor.u32 %v748_v14, %v600_v15  ;;  %v664_v18 = vld [vmem:[#allocation2 + $0xf8] sm:$0xf0]  ;;  %v747_v20 = vld [vmem:[#allocation2 + $0x64] sm:$0xf0]  ;;  %296 = vmatpush.bf16.msra.mxu2 %v599_v12  ;;  %v654_v23 = vld [vmem:[#allocation2 + $0xe0] sm:$0xf] }
   0xc   :  { %309 = vmatpush.bf16.msra.mxu3 %v663_v13  ;;  %v667_v21 = vor.u32 %v764_v16, %v664_v18  ;;  %v591_v22 = vor.u32 %v747_v20, %v590_v19  ;;  %v763_v24 = vld [vmem:[#allocation2 + $0xe4] sm:$0xf0]  ;;  %v746_v25 = vld [vmem:[#allocation2 + $0x64] sm:$0xf]  ;;  %538 = vmatmul.msk.bf16.vlgmr.msra.gmra.mxu0 %vm64_vm0, %v45_v8  ;;  %v592_v27 = vld [vmem:[#allocation2 + $0x68] sm:$0xf0] }
   0xd   :  { %v655_v26 = vor.u32 %v763_v24, %v654_v23  ;;  %v762_v28 = vld [vmem:[#allocation2 + $0xe4] sm:$0xf]  ;;  %v656_v29 = vld [vmem:[#allocation2 + $0xe8] sm:$0xf0]  ;;  %539 = vmatmul.msk.bf16.vlgmr.msra.gmra.mxu1 %vm64_vm0, %v45_v8  ;;  %322 = vmatpush.bf16.msrb.mxu0 %v603_v17  ;;  %v595_v30 = vor.u32 %v746_v25, %v592_v27  ;;  %v582_v31 = vld [vmem:[#allocation2 + $0x50] sm:$0xf] }
   0xe   :  { %v745_v32 = vld [vmem:[#allocation2 + $0x54] sm:$0xf0]  ;;  %v646_v33 = vld [vmem:[#allocation2 + $0xd0] sm:$0xf]  ;;  %335 = vmatpush.bf16.msrb.mxu1 %v667_v21  ;;  %v659_v34 = vor.u32 %v762_v28, %v656_v29  ;;  %v744_v36 = vld [vmem:[#allocation2 + $0x54] sm:$0xf] }
   0xf   :  { %v761_v35 = vld [vmem:[#allocation2 + $0xd4] sm:$0xf0]  ;;  %v584_v37 = vld [vmem:[#allocation2 + $0x58] sm:$0xf0]  ;;  %297 = vmatpush.bf16.msra.mxu2 %v591_v22  ;;  %v583_v38 = vor.u32 %v745_v32, %v582_v31  ;;  %v760_v40 = vld [vmem:[#allocation2 + $0xd4] sm:$0xf] }
  0x10   :  { %310 = vmatpush.bf16.msra.mxu3 %v655_v26  ;;  %v647_v39 = vor.u32 %v761_v35, %v646_v33  ;;  %v648_v41 = vld [vmem:[#allocation2 + $0xd8] sm:$0xf0]  ;;  %v574_v42 = vld [vmem:[#allocation2 + $0x40] sm:$0xf]  ;;  %v743_v43 = vld [vmem:[#allocation2 + $0x44] sm:$0xf0]  ;;  %v587_v46 = vor.u32 %v744_v36, %v584_v37 }
  0x11   :  { %v638_v44 = vld [vmem:[#allocation2 + $0xc0] sm:$0xf]  ;;  %v759_v45 = vld [vmem:[#allocation2 + $0xc4] sm:$0xf0]  ;;  %323 = vmatpush.bf16.msrb.mxu0 %v595_v30  ;;  %v651_v47 = vor.u32 %v760_v40, %v648_v41  ;;  %v742_v48 = vld [vmem:[#allocation2 + $0x44] sm:$0xf]  ;;  %v575_v50 = vor.u32 %v743_v43, %v574_v42 }
  0x12   :  { %336 = vmatpush.bf16.msrb.mxu1 %v659_v34  ;;  %v576_v49 = vld [vmem:[#allocation2 + $0x48] sm:$0xf0]  ;;  %v639_v51 = vor.u32 %v759_v45, %v638_v44  ;;  %v758_v52 = vld [vmem:[#allocation2 + $0xc4] sm:$0xf]  ;;  %v566_v54 = vld [vmem:[#allocation2 + $0x30] sm:$0xf] }
  0x13   :  { %298 = vmatpush.bf16.msra.mxu2 %v583_v38  ;;  %v640_v53 = vld [vmem:[#allocation2 + $0xc8] sm:$0xf0]  ;;  %v741_v55 = vld [vmem:[#allocation2 + $0x34] sm:$0xf0]  ;;  %v630_v56 = vld [vmem:[#allocation2 + $0xb0] sm:$0xf]  ;;  %v579_v58 = vor.u32 %v742_v48, %v576_v49 }
  0x14   :  { %311 = vmatpush.bf16.msra.mxu3 %v647_v39  ;;  %v757_v57 = vld [vmem:[#allocation2 + $0xb4] sm:$0xf0]  ;;  %v643_v59 = vor.u32 %v758_v52, %v640_v53  ;;  %v740_v60 = vld [vmem:[#allocation2 + $0x34] sm:$0xf]  ;;  %v568_v61 = vld [vmem:[#allocation2 + $0x38] sm:$0xf0]  ;;  %v567_v63 = vor.u32 %v741_v55, %v566_v54 }
  0x15   :  { %324 = vmatpush.bf16.msrb.mxu0 %v587_v46  ;;  %v756_v62 = vld [vmem:[#allocation2 + $0xb4] sm:$0xf]  ;;  %v631_v0 = vor.u32 %v757_v57, %v630_v56  ;;  %v632_v1 = vld [vmem:[#allocation2 + $0xb8] sm:$0xf0]  ;;  %v558_v2 = vld [vmem:[#allocation2 + $0x20] sm:$0xf]  ;;  %v571_v6 = vor.u32 %v740_v60, %v568_v61 }
  0x16   :  { %337 = vmatpush.bf16.msrb.mxu1 %v651_v47  ;;  %v739_v3 = vld [vmem:[#allocation2 + $0x24] sm:$0xf0]  ;;  %v622_v4 = vld [vmem:[#allocation2 + $0xa0] sm:$0xf]  ;;  %v635_v7 = vor.u32 %v756_v62, %v632_v1  ;;  %v738_v8 = vld [vmem:[#allocation2 + $0x24] sm:$0xf] }
  0x17   :  { %299 = vmatpush.bf16.msra.mxu2 %v575_v50  ;;  %v755_v5 = vld [vmem:[#allocation2 + $0xa4] sm:$0xf0]  ;;  %v560_v9 = vld [vmem:[#allocation2 + $0x28] sm:$0xf0]  ;;  %v559_v10 = vor.u32 %v739_v3, %v558_v2  ;;  %v754_v12 = vld [vmem:[#allocation2 + $0xa4] sm:$0xf] }
  0x18   :  { %312 = vmatpush.bf16.msra.mxu3 %v639_v51  ;;  %v623_v11 = vor.u32 %v755_v5, %v622_v4  ;;  %v624_v13 = vld [vmem:[#allocation2 + $0xa8] sm:$0xf0]  ;;  %v563_v14 = vor.u32 %v738_v8, %v560_v9  ;;  %v550_v16 = vld [vmem:[#allocation2 + $0x10] sm:$0xf]  ;;  %v737_v17 = vld [vmem:[#allocation2 + $0x14] sm:$0xf0] }
  0x19   :  { %325 = vmatpush.bf16.msrb.mxu0 %v579_v58  ;;  %v627_v15 = vor.u32 %v754_v12, %v624_v13  ;;  %v614_v18 = vld [vmem:[#allocation2 + $0x90] sm:$0xf]  ;;  %v551_v19 = vor.u32 %v737_v17, %v550_v16  ;;  %v753_v20 = vld [vmem:[#allocation2 + $0x94] sm:$0xf0]  ;;  %v736_v21 = vld [vmem:[#allocation2 + $0x14] sm:$0xf] }
  0x1a   :  { %338 = vmatpush.bf16.msrb.mxu1 %v643_v59  ;;  %v552_v22 = vld [vmem:[#allocation2 + $0x18] sm:$0xf0]  ;;  %v615_v23 = vor.u32 %v753_v20, %v614_v18  ;;  %v752_v25 = vld [vmem:[#allocation2 + $0x94] sm:$0xf]  ;;  %v542_v28 = vld [vmem:[#allocation2] sm:$0xf] }
  0x1b   :  { %300 = vmatpush.bf16.msra.mxu2 %v567_v63  ;;  %v555_v24 = vor.u32 %v736_v21, %v552_v22  ;;  %v616_v26 = vld [vmem:[#allocation2 + $0x98] sm:$0xf0]  ;;  %v735_v29 = vld [vmem:[#allocation2 + $0x4] sm:$0xf0]  ;;  %v606_v30 = vld [vmem:[#allocation2 + $0x80] sm:$0xf] }
  0x1c   :  { %313 = vmatpush.bf16.msra.mxu3 %v631_v0  ;;  %v619_v27 = vor.u32 %v752_v25, %v616_v26  ;;  %v543_v31 = vor.u32 %v735_v29, %v542_v28  ;;  %v751_v32 = vld [vmem:[#allocation2 + $0x84] sm:$0xf0]  ;;  %v734_v33 = vld [vmem:[#allocation2 + $0x4] sm:$0xf]  ;;  %v544_v34 = vld [vmem:[#allocation2 + $0x8] sm:$0xf0] }
  0x1d   :  { %326 = vmatpush.bf16.msrb.mxu0 %v571_v6  ;;  %v607_v35 = vor.u32 %v751_v32, %v606_v30  ;;  %v547_v36 = vor.u32 %v734_v33, %v544_v34  ;;  %v750_v37 = vld [vmem:[#allocation2 + $0x84] sm:$0xf]  ;;  %v608_v38 = vld [vmem:[#allocation2 + $0x88] sm:$0xf0]  ;;  %v781_v40 = vld [vmem:[%s968_s5 + $0x78] sm:$0xff]  ;;  %s520_s28 = sshll.u32 %s970_s7, 4  ;;  %s521_s28 = int_to_ptr.hbm [resolvable:$true] %s520_s28 }
  0x1e   :  { %339 = vmatpush.bf16.msrb.mxu1 %v635_v7  ;;  %v611_v39 = vor.u32 %v750_v37, %v608_v38  ;;  %v773_v41 = vld [vmem:[%s968_s5 + $0x38] sm:$0xff]  ;;  %v780_v42 = vld [vmem:[%s968_s5 + $0x70] sm:$0xff]  ;;  %v779_v44 = vld [vmem:[%s968_s5 + $0x68] sm:$0xff]  ;;  %vm511_vm1 = vcmask 261120  }
  0x1f   :  { %301 = vmatpush.bf16.msra.mxu2 %v559_v10  ;;  %v772_v43 = vld [vmem:[%s968_s5 + $0x30] sm:$0xff]  ;;  %v771_v45 = vld [vmem:[%s968_s5 + $0x28] sm:$0xff]  ;;  %v778_v46 = vld [vmem:[%s968_s5 + $0x60] sm:$0xff] }
  0x20   :  { %314 = vmatpush.bf16.msra.mxu3 %v623_v11  ;;  %v770_v47 = vld [vmem:[%s968_s5 + $0x20] sm:$0xff]  ;;  %v777_v48 = vld [vmem:[%s968_s5 + $0x58] sm:$0xff]  ;;  %v776_v50 = vld [vmem:[%s968_s5 + $0x50] sm:$0xff] }
  0x21   :  { %327 = vmatpush.bf16.msrb.mxu0 %v563_v14  ;;  %v48_v49 = vld [vmem:[%s965_s2] sm:$0x3]  ;;  %v769_v63 = vld [vmem:[%s968_s5 + $0x18] sm:$0xff]  ;;  %v775_v0 = vld [vmem:[%s968_s5 + $0x48] sm:$0xff] }
  0x22   :  { %340 = vmatpush.bf16.msrb.mxu1 %v627_v15  ;;  %v50_v51 = vperm.slane %v48_v49, 0  ;;  %v51_v52 = vperm.slane %v48_v49, 1  ;;  %v768_v1 = vld [vmem:[%s968_s5 + $0x10] sm:$0xff]  ;;  %v774_v2 = vld [vmem:[%s968_s5 + $0x40] sm:$0xff]  ;;  %v767_v3 = vld [vmem:[%s968_s5 + $0x8] sm:$0xff] }
  0x23   :  { %302 = vmatpush.bf16.msra.mxu2 %v551_v19  ;;  %v766_v4 = vld [vmem:[%s968_s5] sm:$0xff] }
  0x24   :  { %315 = vmatpush.bf16.msra.mxu3 %v615_v23  ;;  %v130_v5 = vld [vmem:[%s967_s4] sm:$0x3] }
  0x25   :  { %328 = vmatpush.bf16.msrb.mxu0 %v555_v24  ;;  %v133_v6 = vperm.slane %v130_v5, 1  ;;  %v132_v11 = vperm.slane %v130_v5, 0  ;;  %v786_v25 = vld [vmem:[%s969_s6] ss:$0 sm:$0xff] }
  0x26   :  { %341 = vmatpush.bf16.msrb.mxu1 %v619_v27 }
  0x27   :  { %303 = vmatpush.bf16.msra.mxu2 %v543_v31 }
  0x28   :  { %316 = vmatpush.bf16.msra.mxu3 %v607_v35 }
  0x29   :  { %329 = vmatpush.bf16.msrb.mxu0 %v547_v36 }
  0x2a   :  { %342 = vmatpush.bf16.msrb.mxu1 %v611_v39 }
  0x2b   :  { %484 = vmatpush.bf16.msrb.mxu2 %v773_v41 }
  0x2c   :  { %497 = vmatpush.bf16.msrb.mxu3 %v781_v40 }
  0x2f   :  { %485 = vmatpush.bf16.msrb.mxu2 %v772_v43 }
  0x30   :  { %498 = vmatpush.bf16.msrb.mxu3 %v780_v42 }
  0x33   :  { %486 = vmatpush.bf16.msrb.mxu2 %v771_v45 }
  0x34   :  { %499 = vmatpush.bf16.msrb.mxu3 %v779_v44 }
  0x37   :  { %487 = vmatpush.bf16.msrb.mxu2 %v770_v47 }
  0x38   :  { %500 = vmatpush.bf16.msrb.mxu3 %v778_v46 }
  0x3b   :  { %488 = vmatpush.bf16.msrb.mxu2 %v769_v63 }
  0x3c   :  { %501 = vmatpush.bf16.msrb.mxu3 %v777_v48 }
  0x3f   :  { %489 = vmatpush.bf16.msrb.mxu2 %v768_v1 }
  0x40   :  { %502 = vmatpush.bf16.msrb.mxu3 %v776_v50 }
  0x43   :  { %490 = vmatpush.bf16.msrb.mxu2 %v767_v3 }
  0x44   :  { %503 = vmatpush.bf16.msrb.mxu3 %v775_v0 }
  0x47   :  { %491 = vmatpush.bf16.msrb.mxu2 %v766_v4 }
  0x48   :  { %504 = vmatpush.bf16.msrb.mxu3 %v774_v2 }
  0x89   :  { %v77_v53 = vpop.f32.mrf.mxu0 }
  0x8a   :  { %v78_v54 = vadd.f32 %v77_v53, %v50_v51  ;;  %v90_v55 = vpop.f32.mrf.mxu1 }
  0x8b   :  { %v91_v56 = vadd.f32 %v90_v55, %v51_v52 }
  0x8c   :  { %v94_v57 = vmax.f32 %v78_v54, 0.0 }
  0x8d   :  { %v95_v58 = vmax.f32 %v91_v56, 0.0 }
  0x8e   :  { %v96_v59 = vpack.c.bf16 %v94_v57, %v94_v57 }
  0x8f   :  { %v97_v60 = vpack.c.bf16 %v95_v58, %v95_v58 }
  0x90   :  { %304 = vmatmul.bf16.vlgmr.msra.gmra.mxu2 %v96_v59  ;;  %330 = vmatmul.bf16.vlgmr.msrb.gmra.mxu0 %v96_v59 }
  0x91   :  { %317 = vmatmul.bf16.vlgmr.msra.gmra.mxu3 %v97_v60  ;;  %343 = vmatmul.bf16.vlgmr.msrb.gmra.mxu1 %v97_v60  ;;  %v79_v61 = vpop.f32.mrf.mxu0 }
  0x92   :  { %v92_v62 = vpop.f32.mrf.mxu1 }
 0x10d   :  { %v331_v7 = vpop.f32.mrf.mxu0 }
 0x10e   :  { %v332_v8 = vadd.f32 %v331_v7, %v133_v6  ;;  %v344_v9 = vpop.f32.mrf.mxu1 }
 0x110   :  { %v345_v10 = vadd.f32 %v344_v9, %v332_v8 }
 0x112   :  { %v349_v12 = vmax.f32 %v345_v10, 0.0 }
 0x113   :  { %v305_v13 = vpop.f32.mrf.mxu2 }
 0x114   :  { %v351_v14 = vpack.c.bf16 %v349_v12, %v349_v12  ;;  %v306_v15 = vadd.f32 %v305_v13, %v132_v11  ;;  %v318_v16 = vpop.f32.mrf.mxu3 }
 0x115   :  { %v333_v17 = vpop.f32.mrf.mxu0 }
 0x116   :  { %v319_v18 = vadd.f32 %v318_v16, %v306_v15  ;;  %v346_v19 = vpop.f32.mrf.mxu1  ;;  %505 = vmatmul.bf16.vlgmr.msrb.gmra.mxu3 %v351_v14 }
 0x118   :  { %v348_v20 = vmax.f32 %v319_v18, 0.0 }
 0x11a   :  { %v350_v21 = vpack.c.bf16 %v348_v20, %v348_v20 }
 0x11b   :  { %v307_v22 = vpop.f32.mrf.mxu2 }
 0x11c   :  { %v320_v23 = vpop.f32.mrf.mxu3  ;;  %492 = vmatmul.bf16.vlgmr.msrb.gmra.mxu2 %v350_v21 }
 0x199   :  { %v506_v24 = vpop.f32.mrf.mxu3 }
 0x19f   :  { %v493_v26 = vpop.f32.mrf.mxu2 }
 0x1a0   :  { %v494_v27 = vadd.f32 %v786_v25, %v493_v26 }
 0x1a1   :  { %v508_v28 = vpop.f32.mrf.mxu3 }
 0x1a2   :  { %v507_v29 = vadd.f32 %v506_v24, %v494_v27 }
 0x1a4   :  { %v510_v30 = vmax.f32 %v507_v29, 0.0 }
 0x1a6   :  { %512 = vst.msk [vmem:[#allocation5] sm:$0xff] %vm511_vm1, %v510_v30 }
 0x1a7   :  { %v495_v31 = vpop.f32.mrf.mxu2  ;;  %523 = dma.vmem_to_hbm [thread:$0]  %s519_s25, 128, %s521_s28, [#allocation4]  }
 0x1a8   :  { %837 = dma.done.wait [#allocation4], 128  }
 0x1a9   :  { %838 = vsyncadd [#allocation4], 4294967168 }
 0x1aa   :  { %528 = vsyncpa [#allocation3], 1 }
 0x1ab   :  { %529 = vsyncpa [#allocation4], 1 }

</bundles_post_ra>
